<compile_context>
chip_gen: v7x
topology: tpu7x:2x2x1
jax: 0.10.0
libtpu: 0.0.40
codegen_flags: <defaults>
</compile_context>

<pallas_src>
import functools
import math

import jax
import jax.numpy as jnp
from jax.experimental import pallas as pl
from jax.experimental.pallas import tpu as pltpu

_BN_EPS = 1e-5


# --------------------------------------------------------------------------
# Kernel 1: streaming spatial-sum reduction (memory bound part).
# x_2d is (R, HW) with R = B*C*T.  Output is the tiny per-row sum (R, 1).
# --------------------------------------------------------------------------
def _spatial_sum_kernel(x_ref, o_ref, *, hw_total, need_mask):
    # o_ref is an output-resident f32 accumulator across the HW grid axis.
    @pl.when(pl.program_id(1) == 0)
    def _():
        o_ref[...] = jnp.zeros_like(o_ref)

    xb = x_ref[...].astype(jnp.float32)
    if need_mask:
        # HW is not a multiple of the lane tile: the boundary block's OOB
        # lanes hold unspecified values -> zero them before summing.  Pure
        # VPU work, hidden under the HBM-bound stream.
        thw = xb.shape[-1]
        col = pl.program_id(1) * thw + jax.lax.broadcasted_iota(
            jnp.int32, xb.shape, 1)
        xb = jnp.where(col < hw_total, xb, 0.0)
    o_ref[...] += jnp.sum(xb, axis=-1, keepdims=True)


# --------------------------------------------------------------------------
# Kernel 2: tiny gate epilogue -- one (B*T, 3C) @ (3C, C) matmul (C on lanes)
# + BatchNorm1d (training-mode biased batch stats) + sigmoid.
# --------------------------------------------------------------------------
def _gate_kernel(s_ref, w_ref, gamma_ref, beta_ref, o_ref):
    # s_ref:     (B*T, 3C)  stacked shifted temporal taps (spatial means)
    # w_ref:     (3C, C)    stacked conv taps
    # gamma/beta:(1, C)
    # o_ref:     (B*T, C)   sigmoid gate (f32), C on the lane axis
    z = jnp.dot(s_ref[...], w_ref[...], preferred_element_type=jnp.float32)
    mu = jnp.mean(z, axis=0, keepdims=True)                 # stats over (B, T)
    var = jnp.mean((z - mu) ** 2, axis=0, keepdims=True)    # biased variance
    zn = (z - mu) * jax.lax.rsqrt(var + _BN_EPS) * gamma_ref[...] + beta_ref[...]
    o_ref[...] = jax.nn.sigmoid(zn).astype(o_ref.dtype)


# --------------------------------------------------------------------------
# Kernel 3 (optional fusion): out = x * gate streamed with the same tiling,
# so the (B, C, T, H, W) broadcast gate never materializes in HBM.
# --------------------------------------------------------------------------
def _apply_gate_kernel(x_ref, g_ref, o_ref):
    # x_ref: (tr, thw); g_ref: (tr, 1) f32; broadcast multiply over lanes.
    o_ref[...] = (x_ref[...].astype(jnp.float32) * g_ref[...]).astype(o_ref.dtype)


# --------------------------------------------------------------------------
# Tiling / tuning helpers
# --------------------------------------------------------------------------
def _round_down(x, m):
    return (x // m) * m


def _default_tuning():
    """Per-generation (block_budget_bytes, input_buffer_count) for kernel 1."""
    kind = ""
    try:
        kind = jax.devices()[0].device_kind.lower()
    except Exception:
        pass
    if "v7" in kind:
        # 3.2 TB/s HBM: amortize the ~0.35us/step overhead with big blocks and
        # a 3rd input buffer (3 x 8 MiB still fits the 32 MiB scoped default).
        return 8 << 20, 3
    if "v5" in kind:
        # v5e scoped VMEM default is only 16 MiB and a 2 MiB block is already
        # ~2.5us/step at ~0.82 TB/s: keep depth-2 / 2 MiB.
        return 2 << 20, 2
    # v6e (and unknown): ~1.4 TB/s, 2 MiB is near the roofline plateau; 4 MiB
    # (8 MiB double-buffered) is a mild, safe bump.
    return 4 << 20, 2


def _plan_tiles(R, HW, itemsize, hw_tile_cap, block_budget_bytes):
    """(tr, thw, grid) for streaming an (R, HW) array.

    thw is a lane-dense multiple of 128 (full extent when HW < 128); tr is a
    multiple of the dtype-aware sublane unit.  Ragged boundary blocks are
    allowed (the kernel masks OOB lanes; OOB output rows are clipped on
    store), so there is no full-extent fallback that could blow past the
    block budget or the scoped VMEM limit.
    """
    sub = max(8, 32 // itemsize)               # 8 f32, 16 bf16, 32 int8/fp8
    if HW >= 128:
        thw = max(128, min(_round_down(hw_tile_cap, 128), _round_down(HW, 128)))
    else:
        thw = HW                               # full-extent lane block
    row_cap = max(sub, _round_down(block_budget_bytes // (thw * itemsize), sub))
    if R <= sub:
        tr = R                                 # full-extent row block
    else:
        tr = max(sub, min(row_cap, _round_down(R, sub)))
        if -(-R // tr) < 2:
            # Guarantee >= 2 row tiles so the "parallel" axis can shard across
            # the two v7x TensorCores (one extra ~0.35us step elsewhere).
            tr = max(sub, _round_down(R // 2, sub))
    grid = (-(-R // tr), -(-HW // thw))
    return tr, thw, grid


def _x_block_spec(tr, thw, buffers, total_steps):
    """Input BlockSpec for the streamed x tiles; optionally 3-deep buffered."""
    idx = lambda i, j: (i, j)
    if buffers > 2 and total_steps >= buffers:
        try:
            return pl.BlockSpec((tr, thw), idx, pipeline_mode=pl.Buffered(buffers))
        except (TypeError, AttributeError):
            pass  # older jax without pipeline_mode: default double buffering
    return pl.BlockSpec((tr, thw), idx)


def _vmem_limit(*component_bytes):
    need = sum(int(b) for b in component_bytes) + (8 << 20)   # Mosaic headroom
    # 32 MiB is within every generation's scoped ceiling; cap below v7x's
    # 64 MiB physical VMEM.
    return int(min(max(need, 32 << 20), 56 << 20))


# --------------------------------------------------------------------------
# Wrappers
# --------------------------------------------------------------------------
def _gate_from_sums(sums, conv_w, bn_gamma, bn_beta, B, C, T, HW):
    """Spatial sums (R, 1) -> sigmoid gate (B, C, T) via kernel 2."""
    y = sums.reshape(B, C, T) * (1.0 / float(HW))            # means
    # Stack the three shifted taps (zero temporal padding) so the conv is a
    # single lane-dense matmul; these are tiny XLA ops, fused by a consumer jit.
    y_btc = jnp.transpose(y, (0, 2, 1))                      # (B, T, C)
    ypad = jnp.pad(y_btc, ((0, 0), (1, 1), (0, 0)))          # (B, T+2, C)
    stacked = jnp.concatenate([ypad[:, k:k + T, :] for k in range(3)],
                              axis=-1).reshape(B * T, 3 * C)
    # w_stk[k*C + c_in, c_out] = conv_w[c_out, c_in, k]
    w_stk = jnp.transpose(conv_w, (2, 1, 0)).reshape(3 * C, C)

    gate_btc = pl.pallas_call(
        _gate_kernel,
        out_shape=jax.ShapeDtypeStruct((B * T, C), jnp.float32),
        in_specs=[pl.BlockSpec(memory_space=pltpu.MemorySpace.VMEM)] * 4,
        out_specs=pl.BlockSpec(memory_space=pltpu.MemorySpace.VMEM),
    )(stacked, w_stk, bn_gamma.reshape(1, C), bn_beta.reshape(1, C))

    return jnp.transpose(gate_btc.reshape(B, T, C), (0, 2, 1))   # (B, C, T)


def ls_gate(x, conv_w, bn_gamma, bn_beta, *, hw_tile_cap=2048,
            block_budget_bytes=None, input_buffers=None):
    """Returns the small (B, C, T) sigmoid gate (f32).

    Preferred entry point for consumers that apply / broadcast the gate
    themselves (avoids any x-sized intermediate)."""
    B, C, T, H, W = x.shape
    R, HW = B * C * T, H * W
    itemsize = jnp.dtype(x.dtype).itemsize

    budget, buffers = _default_tuning()
    if block_budget_bytes is not None:
        budget = block_budget_bytes
    if input_buffers is not None:
        buffers = input_buffers

    tr, thw, grid = _plan_tiles(R, HW, itemsize, hw_tile_cap, budget)
    need_mask = (HW % thw) != 0
    blk = tr * thw * itemsize

    x2 = x.reshape(R, HW)                       # contiguous reshape, no copy
    sums = pl.pallas_call(
        functools.partial(_spatial_sum_kernel, hw_total=HW, need_mask=need_mask),
        out_shape=jax.ShapeDtypeStruct((R, 1), jnp.float32),
        grid=grid,
        in_specs=[_x_block_spec(tr, thw, buffers, grid[0] * grid[1])],
        out_specs=pl.BlockSpec((tr, 1), lambda i, j: (i, 0)),
        compiler_params=pltpu.CompilerParams(
            dimension_semantics=("parallel", "arbitrary"),
            vmem_limit_bytes=_vmem_limit(buffers * blk, 2 * tr * 128 * 4)),
    )(x2)

    return _gate_from_sums(sums, conv_w, bn_gamma, bn_beta, B, C, T, HW)


def ls_forward(x, conv_w, bn_gamma, bn_beta, *, hw_tile_cap=2048,
               block_budget_bytes=None, input_buffers=None, out_dtype=None):
    """Module-equivalent forward: returns the broadcast gate (B, C, T, H, W).

    The broadcast is kept lazy (jnp.broadcast_to) so a consumer jit fuses it
    into the downstream multiply instead of writing a full x-sized tensor to
    HBM.  For an explicit fused x * gate, use ls_apply()."""
    B, C, T, H, W = x.shape
    gate = ls_gate(x, conv_w, bn_gamma, bn_beta, hw_tile_cap=hw_tile_cap,
                   block_budget_bytes=block_budget_bytes,
                   input_buffers=input_buffers)
    dt = x.dtype if out_dtype is None else out_dtype
    return jnp.broadcast_to(gate.astype(dt)[:, :, :, None, None],
                            (B, C, T, H, W))


def ls_apply(x, conv_w, bn_gamma, bn_beta, *, hw_tile_cap=2048,
             block_budget_bytes=None, input_buffers=None, out_dtype=None):
    """Fused x * LS(x): the gate never materializes at (B,C,T,H,W) in HBM."""
    B, C, T, H, W = x.shape
    R, HW = B * C * T, H * W
    itemsize = jnp.dtype(x.dtype).itemsize
    dt = x.dtype if out_dtype is None else out_dtype

    gate = ls_gate(x, conv_w, bn_gamma, bn_beta, hw_tile_cap=hw_tile_cap,
                   block_budget_bytes=block_budget_bytes,
                   input_buffers=input_buffers)

    budget, _ = _default_tuning()
    if block_budget_bytes is not None:
        budget = block_budget_bytes
    tr, thw, grid = _plan_tiles(R, HW, itemsize, hw_tile_cap, budget)
    blk_in = tr * thw * itemsize
    blk_out = tr * thw * jnp.dtype(dt).itemsize

    out2 = pl.pallas_call(
        _apply_gate_kernel,
        out_shape=jax.ShapeDtypeStruct((R, HW), dt),
        grid=grid,
        in_specs=[pl.BlockSpec((tr, thw), lambda i, j: (i, j)),
                  pl.BlockSpec((tr, 1), lambda i, j: (i, 0))],
        out_specs=pl.BlockSpec((tr, thw), lambda i, j: (i, j)),
        compiler_params=pltpu.CompilerParams(
            dimension_semantics=("parallel", "parallel"),
            vmem_limit_bytes=_vmem_limit(2 * blk_in, 2 * blk_out,
                                         2 * tr * 128 * 4)),
    )(x.reshape(R, HW), gate.reshape(R, 1))
    return out2.reshape(B, C, T, H, W)


def ls_reference(x, conv_w, bn_gamma, bn_beta):
    """Plain-JAX reference for correctness checking."""
    y = x.astype(jnp.float32).mean(axis=(3, 4))               # (B, C, T)
    T = y.shape[-1]
    y_pad = jnp.pad(y, ((0, 0), (0, 0), (1, 1)))
    z = jnp.zeros(y.shape, jnp.float32)
    for k in range(3):
        z = z + jnp.einsum('oc,bct->bot', conv_w[:, :, k], y_pad[:, :, k:k + T])
    mu = z.mean(axis=(0, 2), keepdims=True)
    var = ((z - mu) ** 2).mean(axis=(0, 2), keepdims=True)
    zn = (z - mu) / jnp.sqrt(var + _BN_EPS) * bn_gamma[None, :, None] \
         + bn_beta[None, :, None]
    a = jax.nn.sigmoid(zn)
    return jnp.broadcast_to(a[:, :, :, None, None], x.shape).astype(x.dtype)


if __name__ == "__main__":
    key = jax.random.PRNGKey(0)

    def init_params(C, k):
        # conv: xavier_normal_ (fan_in = fan_out = C*3); bn: weight=1, bias=0.
        std = math.sqrt(2.0 / (C * 3 + C * 3))
        conv_w = std * jax.random.normal(k, (C, C, 3), dtype=jnp.float32)
        return conv_w, jnp.ones((C,), jnp.float32), jnp.zeros((C,), jnp.float32)

    cases = [
        # (shape, forward kwargs)
        ((2, 4, 8, 16, 16), {}),                     # baseline; >=2 row tiles
        ((2, 16, 8, 7, 7), {}),                      # HW=49 -> full-lane block
        ((2, 8, 8, 16, 16),                          # tiny tile caps force a
         dict(hw_tile_cap=128,                       # (16, 2) grid: accumulator
              block_budget_bytes=8 * 128 * 4)),      # + multi-row parallel axis
        ((1, 4, 5, 10, 30), {}),                     # ragged: R=20 (not /8),
                                                     # HW=300 (not /128): masks
    ]

    for shape, kwargs in cases:
        B, C, T, H, W = shape
        k_x, k_w, key = jax.random.split(key, 3)
        conv_w, bn_gamma, bn_beta = init_params(C, k_w)
        x = jax.random.normal(k_x, shape, dtype=jnp.float32)

        ref = ls_reference(x, conv_w, bn_gamma, bn_beta)

        out = jax.block_until_ready(
            ls_forward(x, conv_w, bn_gamma, bn_beta, **kwargs))
        assert out.shape == shape
        assert jnp.allclose(out, ref, atol=1e-5, rtol=1e-5), shape

        # Fused x * gate path (what a consumer should use so the broadcast
        # gate never hits HBM).
        fused = jax.block_until_ready(
            ls_apply(x, conv_w, bn_gamma, bn_beta, **kwargs))
        assert fused.shape == shape
        assert jnp.allclose(fused, x * ref, atol=1e-4, rtol=1e-4), shape

    print("KERNEL_OK")
</pallas_src>

<mosaic_0001>
module attributes {stable_mosaic.version = 11 : i64} {
  func.func @_spatial_sum_kernel(%arg0: i32, %arg1: i32, %arg2: memref<32x256xf32, #tpu.memory_space<vmem>>, %arg3: memref<32x1xf32, #tpu.memory_space<vmem>>) attributes {dimension_semantics = [#tpu.dimension_semantics<parallel>, #tpu.dimension_semantics<arbitrary>], iteration_bounds = array<i64: 2, 1>, scalar_prefetch = 0 : i64, scratch_operands = 0 : i64, tpu.core_type = #tpu.core_type<tc>, window_params = [{transform_indices = @transform_0, window_bounds = array<i64: 32, 256>}, {transform_indices = @transform_1, window_bounds = array<i64: 32, 1>}]} {
    %c0_i32 = arith.constant 0 : i32
    %0 = arith.cmpi eq, %arg1, %c0_i32 : i32
    %1 = arith.extui %0 : i1 to i32
    %c0_i32_0 = arith.constant 0 : i32
    %2 = arith.cmpi ne, %1, %c0_i32_0 : i32
    scf.if %2 {
      %cst_6 = arith.constant 0.000000e+00 : f32
      %9 = vector.broadcast %cst_6 : f32 to vector<32x1xf32>
      %c0_7 = arith.constant 0 : index
      %c0_8 = arith.constant 0 : index
      %10 = vector.load %arg3[%c0_7, %c0_8] : memref<32x1xf32, #tpu.memory_space<vmem>>, vector<32x1xf32>
      tpu.vector_store %arg3[%c0_7, %c0_8], %9 {strides = array<i32>} : memref<32x1xf32, #tpu.memory_space<vmem>>, vector<32x1xf32>,
    } else {
    }
    %c0 = arith.constant 0 : index
    %c0_1 = arith.constant 0 : index
    %3 = vector.load %arg2[%c0, %c0_1] : memref<32x256xf32, #tpu.memory_space<vmem>>, vector<32x256xf32>
    %c0_2 = arith.constant 0 : index
    %c0_3 = arith.constant 0 : index
    %4 = vector.load %arg3[%c0_2, %c0_3] : memref<32x1xf32, #tpu.memory_space<vmem>>, vector<32x1xf32>
    %cst = arith.constant dense<0.000000e+00> : vector<32xf32>
    %5 = vector.multi_reduction <add>, %3, %cst [1] : vector<32x256xf32> to vector<32xf32>
    %6 = vector.shape_cast %5 : vector<32xf32> to vector<32x1xf32>
    %7 = arith.addf %4, %6 : vector<32x1xf32>
    %c0_4 = arith.constant 0 : index
    %c0_5 = arith.constant 0 : index
    %8 = vector.load %arg3[%c0_4, %c0_5] : memref<32x1xf32, #tpu.memory_space<vmem>>, vector<32x1xf32>
    tpu.vector_store %arg3[%c0_4, %c0_5], %7 {strides = array<i32>} : memref<32x1xf32, #tpu.memory_space<vmem>>, vector<32x1xf32>,
    return
  }
  func.func @transform_0(%arg0: i32, %arg1: i32) -> (i32, i32) {
    %c0_i32 = arith.constant 0 : i32
    return %arg0, %arg1 : i32, i32
  }
  func.func @transform_1(%arg0: i32, %arg1: i32) -> (i32, i32) {
    %c0_i32 = arith.constant 0 : i32
    %c0_i32_0 = arith.constant 0 : i32
    return %arg0, %c0_i32 : i32, i32
  }
}

</mosaic_0001>

<bundles_post_ra>
// kernel: tpu_custom_call.1
= control target key start
LH: loop header
LB: loop body
LE: loop exit
PB: predicated region body
PF: predicated region fallthrough
CT: control target
= control target key end

     0   :  { %6 = vsyncpa [#allocation3], 0  ;;  %s593_s0 = inlined_call_operand.hbm [shape: f32[64,256], index: 0, kind: input, shape index: {}]   ;;  %s594_s1 = inlined_call_operand.vmem [shape: f32[64,1], index: 1, kind: output, shape index: {}]  }
   0x1   :  { %8 = vsyncpa [#allocation3 + $0x1], 0  ;;  %s448_s6 = smov 0   ;;  %s450_s7 = smov 0  }
   0x2   :  { %s452_s8 = smov 0   ;;  %s454_s9 = smov 0  }
   0x3   :  { %s456_s10 = smov 0   ;;  %s458_s11 = smov 0  }
   0x4 LB: > { %s278_s12 = sadd.s32 4294967295, %s432_s11   ;;  %s26_s13 = sadd.s32 1, %s428_s10  ;;  %s432_s11 = sphi %s458_s11, %s14_s11   ;;  %s428_s10 = sphi %s456_s10, %s602_s10   ;;  %s424_s9 = sphi %s454_s9, %s601_s9   ;;  %s420_s8 = sphi %s452_s8, %s600_s8   ;;  %s416_s7 = sphi %s450_s7, %s599_s7   ;;  %s412_s6 = sphi %s448_s6, %s598_s6  }
   0x5   : > { %p28_p0 = scmp.ge.s32.totalorder %s26_s13, 2  ;;  %s35_s14 = sadd.s32 1, %s420_s8 }
   0x6   : > { %p42_p1 = scmp.ne.s32.totalorder %s420_s8, %s416_s7  ;;  %p43_p2 = scmp.eq.s32.totalorder %s432_s11, 0 }
   0x7   : > { %s604_s13 = smov (%p28_p0, %s26_s13), 0  ;;  %p48_p4 = scmp.ne.s32.totalorder %s416_s7, %s412_s6 }
   0x8   : > { %p484_p3 = por %p43_p2, %p42_p1  ;;  %s30_s16 = ssub.s32 %s428_s10, %s604_s13 }
   0x9   : > { %p49_p5 = scmp.eq.s32.totalorder %s278_s12, 0  ;;  %p33_p6 = scmp.eq.s32.totalorder %s30_s16, 0 }
   0xa   : > { %p300_p8 = scmp.lt.s32.totalorder %s432_s11, 2  ;;  %s98_s19 = sand.u32 1, %s420_s8  }
   0xb   : > { %p491_p7 = por %p49_p5, %p48_p4  ;;  %s293_s20 = sshll.u32 %s428_s10, 10 }
   0xc   : > { %s497_s18 = scalar_select %p33_p6, %s420_s8, %s35_s14  }
   0xd   : > { %s282_s21 = sshll.u32 %s98_s19, 6  ;;  %s504_s24 = scalar_lea.hbm %s593_s0, %s293_s20 }
   0xe   : > { %s102_s25 = scalar_lea.vmem [#allocation2], %s282_s21  ;;  %p508_p9 = pnand %p300_p8, %p484_p3 }
   0xf   : > { %s112_s26 = sshll.u32 %s102_s25, 4  ;;  %s514_s28 = scalar_lea.sflag [#allocation3], %s98_s19  ;;  %s512_s26 = int_to_ptr.vmem [resolvable:$true] %s112_s26 }
  0x10   : > { %s352_s29 = scalar_lea.hbm %s504_s24, 1024  ;;  %p354_p11 = pneg %p508_p9 }
  0x11   : > { %p353_p10 = scmp.ne.s32.totalorder %s504_s24, %s352_s29  ;;  %s357_s3 = scalar_lea.hbm %s593_s0, 2048 }
  0x12   : > { %p358_p0 = scmp.lt.u32.totalorder %s504_s24, %s593_s0  ;;  %p359_p1 = scmp.lt.u32.totalorder %s357_s3, %s352_s29 }
  0x13   : > { %p355_p12 = pnand %p354_p11, %p353_p10  ;;  %p361_p3 = scmp.lt.u32.totalorder %s352_s29, %s504_s24 }
  0x14   : > { %p360_p2 = por %p359_p1, %p358_p0 }
  0x15   : > { %p356_p13 = pneg %p355_p12 }
  0x16   : > { %p362_p4 = por %p361_p3, %p360_p2 }
  0x18   : > { %p363_p5 = pnand %p362_p4, %p356_p13 }
  0x1a   : > { %366 = shalt.err (!%p363_p5)
}
  0x1b   : > { %s367_s6 = scalar_lea.vmem %s512_s26, 1024  ;;  %s434_s12 = smov [#allocation2]  }
  0x1c   : > { %p368_p6 = scmp.ne.s32.totalorder %s512_s26, %s367_s6  ;;  %s372_s14 = sshll.u32 %s434_s12, 4  ;;  %s373_s14 = int_to_ptr.vmem [resolvable:$false] %s372_s14 }
  0x1d   : > { %s374_s15 = scalar_lea.vmem %s373_s14, 2048  ;;  %p375_p12 = scmp.lt.s32.totalorder %s512_s26, %s373_s14 }
  0x1e   : > { %p370_p8 = pnand %p368_p6, %p354_p11  ;;  %p376_p0 = scmp.lt.s32.totalorder %s374_s15, %s367_s6 }
  0x20   : > { %p371_p10 = pneg %p370_p8  ;;  %p377_p1 = por %p376_p0, %p375_p12 }
  0x22   : > { %p378_p2 = pnand %p377_p1, %p371_p10 }
  0x24   : > { %381 = shalt.err (!%p378_p2)
}
  0x25   : > { %s435_s16 = smov 256   ;;  %s436_s19 = smov 16  }
  0x26   : > { %299 = dma.hbm_to_vmem [thread:$0]  (!%p508_p9), %s504_s24, 1024, %s512_s26, %s514_s28, %s435_s16, %s435_s16, %s436_s19  }
  0x27   : > { %p286_p11 = scmp.ge.s32.totalorder %s432_s11, 1  ;;  %p120_p13 = scmp.lt.s32.totalorder %s432_s11, 3 }
  0x29   : > { %p121_p3 = pnand %p286_p11, %p120_p13 }
  0x2a   : > { %s126_s20 = sand.u32 (!%p121_p3), 1, %s416_s7  }
  0x2b   : > { %124 = sbr.rel (%p121_p3) target bundleno = 204 (0xcc), region = 24  ;;  %s287_s21 = sshll.u32 (!%p121_p3), %s126_s20, 6 }
  0x2c   : > { %s127_s22 = scalar_lea.sflag (!%p121_p3), [#allocation3], %s126_s20  ;;  %s130_s23 = scalar_lea.vmem (!%p121_p3), [#allocation2], %s287_s21 }
  0x32   : > { %407 = dma.done.wait (%p491_p7), %s127_s22, 1024  }
  0x33   : > { %409 = vsyncadd (%p491_p7), %s127_s22, 4294966272  ;;  %s288_s25 = sshll.u32 %s424_s9, 2  ;;  %vm161_vm0 = vcmask 7168   ;;  %v166_v0 = vld [vmem:[%s130_s23] sm:$0xff]  ;;  %v167_v1 = vld [vmem:[%s130_s23 + $0x8] sm:$0xff]  ;;  %v437_v3 = vmov 0.0  }
  0x34   : > { %p152_p4 = scmp.lt.s32.totalorder %s288_s25, 7  ;;  %v170_v2 = vld [vmem:[%s130_s23 + $0x20] sm:$0xff]  ;;  %v178_v4 = vadd.f32 %v167_v1, %v166_v0  ;;  %v171_v5 = vld [vmem:[%s130_s23 + $0x28] sm:$0xff]  ;;  %v168_v6 = vld [vmem:[%s130_s23 + $0x10] sm:$0xff] }
  0x35   : > { %v169_v7 = vld [vmem:[%s130_s23 + $0x18] sm:$0xff]  ;;  %v184_v8 = vadd.f32 %v171_v5, %v170_v2  ;;  %v172_v9 = vld [vmem:[%s130_s23 + $0x30] sm:$0xff] }
  0x36   : > { %s606_s25 = smov (!%p152_p4, %s288_s25), 7  ;;  %v173_v10 = vld [vmem:[%s130_s23 + $0x38] sm:$0xff]  ;;  %179 = vadd.xlane.f32.xlu0 %v178_v4  ;;  %v181_v11 = vadd.f32 %v169_v7, %v168_v6 }
  0x37   : > { %s289_s24 = sshll.u32 %s606_s25, 3  ;;  %185 = vadd.xlane.f32.xlu1 %v184_v8  ;;  %v187_v12 = vadd.f32 %v173_v10, %v172_v9 }
  0x38   : > { %s553_s28 = scalar_lea.vmem %s594_s1, %s289_s24 }
  0x39   : > { %162 = vst.msk [vmem:[%s553_s28] sm:$0xff] %vm161_vm0, %v437_v3  ;;  %163 = vst.msk [vmem:[%s553_s28 + $0x8] sm:$0xff] %vm161_vm0, %v437_v3 }
  0x3a   : > { %164 = vst.msk [vmem:[%s553_s28 + $0x10] sm:$0xff] %vm161_vm0, %v437_v3  ;;  %165 = vst.msk [vmem:[%s553_s28 + $0x18] sm:$0xff] %vm161_vm0, %v437_v3  ;;  %182 = vadd.xlane.f32.xlu0 %v181_v11 }
  0x3b   : > { %188 = vadd.xlane.f32.xlu1 %v187_v12 }
  0x40   : > { %v174_v13 = vld [vmem:[%s553_s28] sm:$0xff]  ;;  %v175_v16 = vld [vmem:[%s553_s28 + $0x8] sm:$0xff] }
  0x41   : > { %v176_v15 = vld [vmem:[%s553_s28 + $0x10] sm:$0xff]  ;;  %v177_v17 = vld [vmem:[%s553_s28 + $0x18] sm:$0xff] }
  0xc3   : > { %v180_v14 = vpop.xlane.xlu0 %179 }
  0xc4   : > { %v190_v18 = vadd.f32 %v180_v14, %v174_v13  ;;  %v186_v19 = vpop.xlane.xlu1 %185 }
  0xc5   : > { %v192_v23 = vadd.f32 %v186_v19, %v176_v15 }
  0xc6   : > { %195 = vst.msk [vmem:[%s553_s28] sm:$0xff] %vm161_vm0, %v190_v18 }
  0xc7   : > { %v183_v20 = vpop.xlane.xlu0 %182  ;;  %197 = vst.msk [vmem:[%s553_s28 + $0x10] sm:$0xff] %vm161_vm0, %v192_v23 }
  0xc8   : > { %v191_v21 = vadd.f32 %v183_v20, %v175_v16  ;;  %v189_v22 = vpop.xlane.xlu1 %188 }
  0xc9   : > { %v193_v24 = vadd.f32 %v189_v22, %v177_v17 }
  0xca   : > { %196 = vst.msk [vmem:[%s553_s28 + $0x8] sm:$0xff] %vm161_vm0, %v191_v21 }
  0xcb   : > { %198 = vst.msk [vmem:[%s553_s28 + $0x18] sm:$0xff] %vm161_vm0, %v193_v24 }
  0xcc PF: > { %s14_s11 = sadd.s32 1, %s432_s11   ;;  %s598_s6 = smov %s416_s7 }
  0xcd   : > { %p11_p7 = scmp.ge.s32.totalorder %s14_s11, 4   ;;  %s599_s7 = smov %s420_s8 }
  0xce   : > { %s600_s8 = smov %s497_s18  ;;  %s601_s9 = smov %s428_s10 }
  0xcf   : > { %s602_s10 = smov %s604_s13  ;;  %13 = sbr.rel (!%p11_p7) target bundleno = 4 (0x4), region = 68 }
  0xd6   :  { %221 = vsyncpa [#allocation3], 1 }
  0xd7   :  { %223 = vsyncpa [#allocation3 + $0x1], 1 }

</bundles_post_ra>
